<compile_context>
chip_gen: v7x
topology: tpu7x:2x2x1
jax: 0.10.0
libtpu: 0.0.40
codegen_flags: <defaults>
</compile_context>

<pallas_src>
import jax
import jax.numpy as jnp
from jax.experimental import pallas as pl
from jax.experimental.pallas import tpu as pltpu


# ---------------------------------------------------------------------------
# Fused kernel: out = relu(te1@w1a + te2@w1b + c1) @ w2_tiled + bias_total
#   where bias_total already contains tile(c2, N) + flattened fc2(SE).
# ---------------------------------------------------------------------------
def _make_st_embed_kernel(Et, D, off_w1b, off_c1, off_bias):
    """w1_ref slab rows: [0:Et)=w1a, [off_w1b:+Et)=w1b, [off_c1:+1)=c1.
       w2_ref slab rows: [0:D)=w2 tiled to (D, N*D), [off_bias:+1)=bias_total."""

    def kernel(te1_ref, te2_ref, w1_ref, w2_ref, o_ref):
        f32 = jnp.float32
        # ---- TE first layer: split-K matmul replaces concat(TE1, TE2) ------
        ht = (jnp.dot(te1_ref[...], w1_ref[0:Et, :], preferred_element_type=f32)
              + jnp.dot(te2_ref[...], w1_ref[off_w1b:off_w1b + Et, :],
                        preferred_element_type=f32)
              + w1_ref[off_c1:off_c1 + 1, :])
        ht = jnp.maximum(ht, 0.0)
        # ---- TE second layer, lane-dense: (tm, D) @ (D, N*D) ---------------
        # bias row = tile(c2, N) + flattened SE-branch output, so this single
        # matmul + add realises the original broadcast add SE + TE.
        out = (jnp.dot(ht, w2_ref[0:D, :], preferred_element_type=f32)
               + w2_ref[off_bias:off_bias + 1, :])
        o_ref[...] = out.astype(o_ref.dtype)

    return kernel


# ---------------------------------------------------------------------------
# Host-side helpers
# ---------------------------------------------------------------------------
def fold_bn(params):
    """Fold BatchNorm scale/shift into the pointwise conv: (x@w+b)*s+t == x@(w*s)+(b*s+t)."""
    return {
        "w1": params["w1"] * params["s1"],
        "c1": params["b1"] * params["s1"] + params["t1"],
        "w2": params["w2"] * params["s2"],
        "c2": params["b2"] * params["s2"] + params["t2"],
    }


def _r8(x):
    return -(-x // 8) * 8


def _r128(x):
    return -(-x // 128) * 128


def _pad_rows8(a):
    r = (-a.shape[0]) % 8
    return jnp.pad(a, ((0, r), (0, 0))) if r else a


def _pick_row_tile(M, Et, NO, row_tile):
    """Row tile over B*T rows, sized from the REAL VMEM footprint:
       lane-padded, double-buffered output (tm, NO) + te1/te2 (tm, Et) blocks,
       against a 16 MiB block budget (vmem_limit set to 32 MiB -> 2x headroom).
       Also clamps so the grid has >= 2 steps whenever M >= 16, so v7x's
       second TensorCore gets work under dimension_semantics=("parallel",)."""
    bytes_per_row = 4 * (2 * _r128(NO) + 4 * _r128(Et))   # f32, double-buffered
    budget = 16 * 1024 * 1024
    cap = max(8, (budget // bytes_per_row) // 8 * 8)
    tm = max(8, min(_r8(row_tile), cap))
    if M >= 16:
        tm = min(tm, _r8(-(-M // 2)))                     # largest tm with >= 2 steps
    return min(tm, _r8(M))


def st_embedding(SE, TE_list, se_params, te_params, *, row_tile=2048):
    """SE: (1,1,N,E); TE_list: [ (B,T,1,E), (B,T,1,E) ] -> (B,T,N,D)."""
    _, _, N, E = SE.shape
    B, T, _, Et = TE_list[0].shape
    D = te_params["w2"].shape[1]
    M = B * T
    NO = N * D

    fse = fold_bn(se_params)
    fte = fold_bn(te_params)

    # --- SE branch hoisted out of the kernel (batch independent, N*D floats)
    se_rows = SE.reshape(N, E)
    hs = jnp.maximum(se_rows @ fse["w1"] + fse["c1"], 0.0)
    se_out = hs @ fse["w2"] + fse["c2"]                          # (N, D)

    # --- Lane-dense parameters: out[m, n*D+d] = (ht@w2)[m,d] + c2[d] + se_out[n,d]
    w2_big = jnp.tile(fte["w2"], (1, N))                         # (D, N*D)
    bias_total = (se_out + fte["c2"]).reshape(1, NO)             # (1, N*D)

    # Split-K first-layer weight: kernel never concatenates TE in HBM.
    w1a, w1b = fte["w1"][:Et], fte["w1"][Et:]

    # Pack tiny params into two resident slabs (one per lane width).
    w1a_p, w1b_p, c1_p = _pad_rows8(w1a), _pad_rows8(w1b), _pad_rows8(fte["c1"])
    off_w1b = w1a_p.shape[0]
    off_c1 = off_w1b + w1b_p.shape[0]
    w1_slab = jnp.concatenate([w1a_p, w1b_p, c1_p], axis=0)      # (R1, D)

    w2_p, bias_p = _pad_rows8(w2_big), _pad_rows8(bias_total)
    off_bias = w2_p.shape[0]
    w2_slab = jnp.concatenate([w2_p, bias_p], axis=0)            # (R2, N*D)

    te1 = TE_list[0].reshape(M, Et)
    te2 = TE_list[1].reshape(M, Et)

    tm = _pick_row_tile(M, Et, NO, row_tile)
    n_steps = pl.cdiv(M, tm)
    M_pad = n_steps * tm
    if M_pad != M:                                               # no silent truncation
        pad = M_pad - M
        te1 = jnp.pad(te1, ((0, pad), (0, 0)))
        te2 = jnp.pad(te2, ((0, pad), (0, 0)))

    kernel = _make_st_embed_kernel(Et, D, off_w1b, off_c1, off_bias)

    out = pl.pallas_call(
        kernel,
        out_shape=jax.ShapeDtypeStruct((M_pad, NO), SE.dtype),
        grid_spec=pltpu.PrefetchScalarGridSpec(
            num_scalar_prefetch=0,
            grid=(n_steps,),
            in_specs=[
                pl.BlockSpec((tm, Et), lambda i: (i, 0)),        # TE part 1
                pl.BlockSpec((tm, Et), lambda i: (i, 0)),        # TE part 2
                pl.BlockSpec(w1_slab.shape, lambda i: (0, 0)),   # resident param slab
                pl.BlockSpec(w2_slab.shape, lambda i: (0, 0)),   # resident param slab
            ],
            out_specs=pl.BlockSpec((tm, NO), lambda i: (i, 0)),  # lane-dense output
        ),
        compiler_params=pltpu.CompilerParams(
            dimension_semantics=("parallel",),                   # v7x: 2 TCs share rows
            vmem_limit_bytes=32 * 1024 * 1024),
    )(te1, te2, w1_slab, w2_slab)

    if M_pad != M:
        out = out[:M]
    return out.reshape(B, T, N, D)


# ---------------------------------------------------------------------------
# Parameter init (deterministic, synthetic) with BN expressed as scale/shift.
# ---------------------------------------------------------------------------
def init_fc2_params(key, cin, d, eps=1e-5):
    ks = jax.random.split(key, 12)
    p = {}
    for li, (ci, co) in enumerate([(cin, d), (d, d)]):
        w = jax.random.normal(ks[6 * li + 0], (ci, co), jnp.float32) * 0.1
        b = jax.random.normal(ks[6 * li + 1], (1, co), jnp.float32) * 0.1
        gamma = 1.0 + 0.1 * jax.random.normal(ks[6 * li + 2], (1, co), jnp.float32)
        beta = 0.1 * jax.random.normal(ks[6 * li + 3], (1, co), jnp.float32)
        mean = 0.1 * jax.random.normal(ks[6 * li + 4], (1, co), jnp.float32)
        var = 1.0 + jnp.abs(jax.random.normal(ks[6 * li + 5], (1, co), jnp.float32))
        s = gamma / jnp.sqrt(var + eps)
        t = beta - mean * s
        p[f"w{li + 1}"], p[f"b{li + 1}"] = w, b
        p[f"s{li + 1}"], p[f"t{li + 1}"] = s, t
    return p


# ---------------------------------------------------------------------------
# Pure-JAX references for correctness checks
# ---------------------------------------------------------------------------
def _fc2_ref_folded(x, fp):
    h = jnp.maximum(x @ fp["w1"] + fp["c1"], 0.0)
    return h @ fp["w2"] + fp["c2"]


def _fc2_ref_unfolded(x, p):
    h = x @ p["w1"] + p["b1"]
    h = h * p["s1"] + p["t1"]
    h = jnp.maximum(h, 0.0)
    y = h @ p["w2"] + p["b2"]
    return y * p["s2"] + p["t2"]


def _st_embedding_ref(SE, TE_list, se_params, te_params, fc2_ref):
    _, _, N, E = SE.shape
    B, T, _, _ = TE_list[0].shape
    se_out = fc2_ref(SE.reshape(N, E), se_params)
    te = jnp.concatenate(TE_list, axis=-1).reshape(B * T, -1)
    te_out = fc2_ref(te, te_params)
    return (te_out[:, None, :] + se_out[None, :, :]).reshape(B, T, N, -1)


if __name__ == "__main__":
    # conf: emb_size=32, site_num=16, input_length=8 ; D=32 ; batch=2
    E, D, N, B, T = 32, 32, 16, 2, 8

    key = jax.random.PRNGKey(0)
    k_se, k_te1, k_te2, k_pse, k_pte = jax.random.split(key, 5)

    SE = jax.random.normal(k_se, (1, 1, N, E), jnp.float32)
    TE = [jax.random.normal(k_te1, (B, T, 1, E), jnp.float32),
          jax.random.normal(k_te2, (B, T, 1, E), jnp.float32)]

    se_params = init_fc2_params(k_pse, E, D)
    te_params = init_fc2_params(k_pte, 2 * E, D)

    out = st_embedding(SE, TE, se_params, te_params)
    out = jax.block_until_ready(out)
    assert out.shape == (B, T, N, D)

    # Tight check against a reference that uses the same folded-BN weights
    # (mathematically identical forward; robust to backend matmul precision).
    ref_folded = _st_embedding_ref(
        SE, TE, fold_bn(se_params), fold_bn(te_params), _fc2_ref_folded)
    assert jnp.allclose(out, ref_folded, atol=1e-5, rtol=1e-5)

    # Loose sanity check against the original unfolded BN form (guards against
    # a wrong fold; loose tolerance absorbs matmul-precision / op-order diffs).
    ref_unfolded = _st_embedding_ref(
        SE, TE, se_params, te_params, _fc2_ref_unfolded)
    assert jnp.allclose(out, ref_unfolded, atol=5e-2, rtol=5e-2)

    print("KERNEL_OK")
</pallas_src>

<mosaic_0001>
module attributes {stable_mosaic.version = 11 : i64} {
  func.func @kernel(%arg0: i32, %arg1: memref<8x32xf32, #tpu.memory_space<vmem>>, %arg2: memref<8x32xf32, #tpu.memory_space<vmem>>, %arg3: memref<72x32xf32, #tpu.memory_space<vmem>>, %arg4: memref<40x512xf32, #tpu.memory_space<vmem>>, %arg5: memref<8x512xf32, #tpu.memory_space<vmem>>) attributes {dimension_semantics = [#tpu.dimension_semantics<parallel>], iteration_bounds = array<i64: 2>, scalar_prefetch = 0 : i64, scratch_operands = 0 : i64, tpu.core_type = #tpu.core_type<tc>, window_params = [{transform_indices = @transform_0, window_bounds = array<i64: 8, 32>}, {transform_indices = @transform_1, window_bounds = array<i64: 8, 32>}, {pipeline_mode = #tpu.pipeline_mode<synchronous>, transform_indices = @transform_2, window_bounds = array<i64: 72, 32>}, {pipeline_mode = #tpu.pipeline_mode<synchronous>, transform_indices = @transform_3, window_bounds = array<i64: 40, 512>}, {transform_indices = @transform_4, window_bounds = array<i64: 8, 512>}]} {
    %c0 = arith.constant 0 : index
    %c0_0 = arith.constant 0 : index
    %0 = vector.load %arg1[%c0, %c0_0] : memref<8x32xf32, #tpu.memory_space<vmem>>, vector<8x32xf32>
    %c0_1 = arith.constant 0 : index
    %c0_2 = arith.constant 0 : index
    %1 = vector.load %arg3[%c0_1, %c0_2] : memref<72x32xf32, #tpu.memory_space<vmem>>, vector<32x32xf32>
    %cst = arith.constant dense<0.000000e+00> : vector<8x32xf32>
    %2 = tpu.matmul %0, %1, %cst {dimension_numbers = #tpu.dot_dimension_numbers<[1], [0], [0], [1], [0, 0, 1, 1], [], []>} : vector<8x32xf32>, vector<32x32xf32>, vector<8x32xf32> -> vector<8x32xf32>
    %c0_3 = arith.constant 0 : index
    %c0_4 = arith.constant 0 : index
    %3 = vector.load %arg2[%c0_3, %c0_4] : memref<8x32xf32, #tpu.memory_space<vmem>>, vector<8x32xf32>
    %c32 = arith.constant 32 : index
    %c0_5 = arith.constant 0 : index
    %4 = vector.load %arg3[%c32, %c0_5] : memref<72x32xf32, #tpu.memory_space<vmem>>, vector<32x32xf32>
    %cst_6 = arith.constant dense<0.000000e+00> : vector<8x32xf32>
    %5 = tpu.matmul %3, %4, %cst_6 {dimension_numbers = #tpu.dot_dimension_numbers<[1], [0], [0], [1], [0, 0, 1, 1], [], []>} : vector<8x32xf32>, vector<32x32xf32>, vector<8x32xf32> -> vector<8x32xf32>
    %6 = arith.addf %2, %5 : vector<8x32xf32>
    %c64 = arith.constant 64 : index
    %c0_7 = arith.constant 0 : index
    %7 = vector.load %arg3[%c64, %c0_7] : memref<72x32xf32, #tpu.memory_space<vmem>>, vector<1x32xf32>
    %8 = vector.broadcast %7 : vector<1x32xf32> to vector<8x32xf32>
    %9 = arith.addf %6, %8 : vector<8x32xf32>
    %cst_8 = arith.constant 0.000000e+00 : f32
    %10 = vector.broadcast %cst_8 : f32 to vector<8x32xf32>
    %11 = arith.maximumf %9, %10 : vector<8x32xf32>
    %c0_9 = arith.constant 0 : index
    %c0_10 = arith.constant 0 : index
    %12 = vector.load %arg4[%c0_9, %c0_10] : memref<40x512xf32, #tpu.memory_space<vmem>>, vector<32x512xf32>
    %cst_11 = arith.constant dense<0.000000e+00> : vector<8x512xf32>
    %13 = tpu.matmul %11, %12, %cst_11 {dimension_numbers = #tpu.dot_dimension_numbers<[1], [0], [0], [1], [0, 0, 1, 1], [], []>} : vector<8x32xf32>, vector<32x512xf32>, vector<8x512xf32> -> vector<8x512xf32>
    %c32_12 = arith.constant 32 : index
    %c0_13 = arith.constant 0 : index
    %14 = vector.load %arg4[%c32_12, %c0_13] : memref<40x512xf32, #tpu.memory_space<vmem>>, vector<1x512xf32>
    %15 = vector.broadcast %14 : vector<1x512xf32> to vector<8x512xf32>
    %16 = arith.addf %13, %15 : vector<8x512xf32>
    %c0_14 = arith.constant 0 : index
    %c0_15 = arith.constant 0 : index
    %17 = vector.load %arg5[%c0_14, %c0_15] : memref<8x512xf32, #tpu.memory_space<vmem>>, vector<8x512xf32>
    tpu.vector_store %arg5[%c0_14, %c0_15], %16 {strides = array<i32>} : memref<8x512xf32, #tpu.memory_space<vmem>>, vector<8x512xf32>,
    return
  }
  func.func @transform_0(%arg0: i32) -> (i32, i32) {
    %c0_i32 = arith.constant 0 : i32
    %c0_i32_0 = arith.constant 0 : i32
    return %arg0, %c0_i32 : i32, i32
  }
  func.func @transform_1(%arg0: i32) -> (i32, i32) {
    %c0_i32 = arith.constant 0 : i32
    %c0_i32_0 = arith.constant 0 : i32
    return %arg0, %c0_i32 : i32, i32
  }
  func.func @transform_2(%arg0: i32) -> (i32, i32) {
    %c0_i32 = arith.constant 0 : i32
    %c0_i32_0 = arith.constant 0 : i32
    %c0_i32_1 = arith.constant 0 : i32
    return %c0_i32, %c0_i32_0 : i32, i32
  }
  func.func @transform_3(%arg0: i32) -> (i32, i32) {
    %c0_i32 = arith.constant 0 : i32
    %c0_i32_0 = arith.constant 0 : i32
    %c0_i32_1 = arith.constant 0 : i32
    return %c0_i32, %c0_i32_0 : i32, i32
  }
  func.func @transform_4(%arg0: i32) -> (i32, i32) {
    %c0_i32 = arith.constant 0 : i32
    %c0_i32_0 = arith.constant 0 : i32
    return %arg0, %c0_i32 : i32, i32
  }
}

</mosaic_0001>

<bundles_post_ra>
// kernel: tpu_custom_call.1
= control target key start
LH: loop header
LB: loop body
LE: loop exit
PB: predicated region body
PF: predicated region fallthrough
CT: control target
= control target key end

     0   :  { %9 = vsyncpa [#allocation3], 0  ;;  %s1107_s0 = inlined_call_operand.vmem [shape: f32[16,32], index: 0, kind: input, shape index: {}]   ;;  %s1108_s1 = inlined_call_operand.vmem [shape: f32[16,32], index: 1, kind: input, shape index: {}]   ;;  %s1109_s2 = inlined_call_operand.vmem [shape: f32[72,32], index: 2, kind: input, shape index: {}]   ;;  %s1110_s3 = inlined_call_operand.hbm [shape: f32[40,512], index: 3, kind: input, shape index: {}]   ;;  %s1111_s4 = inlined_call_operand.hbm [shape: f32[16,512], index: 4, kind: output, shape index: {}]  }
   0x1   :  { %10 = vsyncpa [#allocation4], 0 }
   0x2   :  { %12 = vsyncpa [#allocation4 + $0x1], 0  ;;  %s938_s15 = smov 0   ;;  %s940_s16 = smov 0  }
   0x3   :  { %s942_s17 = smov 0   ;;  %s944_s18 = smov 0  }
   0x4 LB: > { %s959_s19 = sadd.s32 4294967295, %s904_s18   ;;  %s675_s20 = sadd.s32 4294967294, %s904_s18   ;;  %s904_s18 = sphi %s944_s18, %s1127_s18   ;;  %s900_s17 = sphi %s942_s17, %s1126_s17   ;;  %s896_s16 = sphi %s940_s16, %s1125_s16   ;;  %s892_s15 = sphi %s938_s15, %s1124_s15  }
   0x5   : > { %s963_s21 = sadd.s32 1, %s904_s18   ;;  %s119_s22 = sadd.s32 1, %s900_s17 }
   0x6   : > { %s116_s23 = ssub.s32 %s904_s18, %s963_s21  ;;  %p129_p0 = scmp.ne.s32.totalorder %s900_s17, %s896_s16 }
   0x7   : > { %p117_p1 = scmp.eq.s32.totalorder %s116_s23, 0  ;;  %p130_p2 = scmp.eq.s32.totalorder %s959_s19, 1 }
   0x8   : > { %p135_p3 = scmp.ne.s32.totalorder %s896_s16, %s892_s15  ;;  %p136_p4 = scmp.eq.s32.totalorder %s675_s20, 1 }
   0x9   : > { %s974_s24 = scalar_select %p117_p1, %s900_s17, %s119_s22  }
   0xa   : > { %p976_p5 = por %p130_p2, %p129_p0  ;;  %p980_p6 = por %p136_p4, %p135_p3 }
   0xb   : > { %p676_p7 = scmp.ge.s32.totalorder %s904_s18, 1  ;;  %p143_p8 = scmp.lt.s32.totalorder %s904_s18, 3 }
   0xc   : > { %s1115_s25 = scalar_select %p976_p5, 1, 0 }
   0xd   : > { %s1116_s26 = scalar_select %p980_p6, 1, 0 }
   0xe   : > { %p1112_p9 = scmp.eq.s32.totalorder %s959_s19, 0  ;;  %p987_p10 = pnand %p676_p7, %p143_p8 }
   0xf   : > { %s906_s28 = smov [#allocation2]   ;;  %s810_s7 = scalar_lea.hbm %s1110_s3, 2560 }
  0x10   : > { %s1117_s27 = scalar_select %p987_p10, 1, 0 }
  0x11   : > { %s158_s29 = sshll.u32 %s906_s28, 4  ;;  %p761_p11 = pneg %p987_p10  ;;  %s159_s29 = int_to_ptr.vmem [resolvable:$true] %s158_s29 }
  0x12   : > { %p811_p13 = scmp.ne.s32.totalorder %s1110_s3, %s810_s7  ;;  %p817_p3 = scmp.lt.u32.totalorder %s810_s7, %s1110_s3 }
  0x13   : > { %p995_p12 = pnand %p1112_p9, %p761_p11 }
  0x15   : > { %p812_p0 = pneg %p995_p12 }
  0x17   : > { %p813_p1 = pnand %p812_p0, %p811_p13 }
  0x19   : > { %p814_p2 = pneg %p813_p1 }
  0x1b   : > { %p819_p4 = pnand %p817_p3, %p814_p2 }
  0x1d   : > { %822 = shalt.err (!%p819_p4)
}
  0x1e   : > { %s823_s12 = scalar_lea.vmem %s159_s29, 2560  ;;  %p831_p9 = scmp.lt.s32.totalorder %s159_s29, %s159_s29 }
  0x1f   : > { %p824_p7 = scmp.ne.s32.totalorder %s159_s29, %s823_s12  ;;  %p832_p6 = scmp.lt.s32.totalorder %s823_s12, %s823_s12 }
  0x21   : > { %p826_p8 = pnand %p824_p7, %p812_p0  ;;  %p833_p5 = por %p832_p6, %p831_p9 }
  0x23   : > { %p827_p11 = pneg %p826_p8 }
  0x25   : > { %p834_p10 = pnand %p833_p5, %p827_p11 }
  0x27   : > { %837 = shalt.err (!%p834_p10)
}
  0x28   : > { %s907_s13 = smov 512   ;;  %s908_s14 = smov 32  }
  0x29   : > { %764 = dma.hbm_to_vmem [thread:$0]  (!%p995_p12), %s1110_s3, 2560, %s159_s29, [#allocation3], %s907_s13, %s907_s13, %s908_s14  }
  0x2a   : > { %p1119_p13 = scmp.ne.s32.totalorder %s1117_s27, 0 }
  0x2b   : > { %p1120_p1 = scmp.eq.s32.totalorder (!%p1119_p13), %s959_s19, 0 }
  0x2c   : > { %188 = sbr.rel (%p1119_p13) target bundleno = 510 (0x1fe), region = 36 }
  0x33   : > { %883 = dma.done.wait (%p1120_p1), [#allocation3], 2560   ;;  %p1121_p0 = pmov %p1120_p1 }
  0x34   : > { %p217_p5 = scmp.lt.s32.totalorder %s959_s19, 1  ;;  %v909_v0 = vmov 0.0|0.0   ;;  %vm910_vm0 = vmmov 0   ;;  %v911_v1 = vmov 0.0   ;;  %v231_v2 = vld [vmem:[%s1109_s2 + $0x20] sm:$0xff]  ;;  %v232_v3 = vld [vmem:[%s1109_s2 + $0x28] sm:$0xff]  ;;  %v408_v48 = vlaneseq }
  0x35   : > { %885 = vsyncadd (%p1121_p0), [#allocation3], 4294964736  ;;  %727 = vmatprep.subr.bf16.mxu0 %v909_v0  ;;  %733 = vmatprep.subr.bf16.mxu1 %v909_v0  ;;  %v226_v4 = vld [vmem:[%s1109_s2] sm:$0xff]  ;;  %v728_v5 = vpack.c.bf16 %v232_v3, %v231_v2  ;;  %v227_v6 = vld [vmem:[%s1109_s2 + $0x8] sm:$0xff]  ;;  %vm235_vm1 = vcmask 261120   ;;  %s214_s9 = sand.u32 1, %s896_s16  }
  0x36   : > { %713 = vmatprep.mubr.msk.f32.mxu0 %vm910_vm0, %v911_v1  ;;  %724 = vmatprep.mubr.msk.f32.mxu1 %vm910_vm0, %v911_v1  ;;  %s218_s23 = scalar_select %p217_p5, %s959_s19, 1  ;;  %v233_v7 = vld [vmem:[%s1109_s2 + $0x30] sm:$0xff]  ;;  %v234_v8 = vld [vmem:[%s1109_s2 + $0x38] sm:$0xff]  ;;  %v734_v9 = vpack.c.bf16 %v227_v6, %v226_v4  ;;  %v390_v13 = vld [vmem:[#allocation2 + $0x8] sm:$0xff]  ;;  %v409_v49 = vshrl.u32 %v408_v48, 7 }
  0x37   : > { %v228_v10 = vld [vmem:[%s1109_s2 + $0x10] sm:$0xff]  ;;  %v229_v11 = vld [vmem:[%s1109_s2 + $0x18] sm:$0xff]  ;;  %729 = vmatpush3.bf16.msra.mxu0 %v728_v5  ;;  %v731_v12 = vpack.c.bf16 %v234_v8, %v233_v7  ;;  %v394_v14 = vld [vmem:[#allocation2 + $0x28] sm:$0xff]  ;;  %s681_s10 = sshll.u32 %s214_s9, 5  ;;  %s694_s11 = sshll.u32 %s959_s19, 9 }
  0x38   : > { %s682_s13 = sshll.u32 %s218_s23, 3  ;;  %735 = vmatpush3.bf16.msra.mxu1 %v734_v9  ;;  %730 = vmatprep.subr.bf16.mxu0 %v909_v0  ;;  %v737_v15 = vpack.c.bf16 %v229_v11, %v228_v10  ;;  %v739_v16 = vpack.c.bf16 %v394_v14, %v390_v13  ;;  %v392_v17 = vld [vmem:[#allocation2 + $0x18] sm:$0xff]  ;;  %v389_v22 = vld [vmem:[#allocation2] sm:$0xff]  ;;  %v391_v24 = vld [vmem:[#allocation2 + $0x10] sm:$0xff]  ;;  %v410_v50 = vsub.s32 0, %v409_v49  ;;  %v418_v51 = vsub.s32 2, %v409_v49  ;;  %s1065_s22 = scalar_lea.hbm %s1111_s4, %s694_s11 }
  0x39   : > { %s224_s23 = scalar_lea.vmem %s1108_s1, %s682_s13  ;;  %v396_v18 = vld [vmem:[#allocation2 + $0x38] sm:$0xff]  ;;  %736 = vmatprep.subr.bf16.mxu1 %v909_v0  ;;  %s220_s6 = scalar_lea.vmem %s1107_s0, %s682_s13  ;;  %v393_v23 = vld [vmem:[#allocation2 + $0x20] sm:$0xff]  ;;  %v395_v26 = vld [vmem:[#allocation2 + $0x30] sm:$0xff]  ;;  %v414_v53 = vsub.s32 1, %v409_v49  ;;  %v422_v54 = vsub.s32 3, %v409_v49 }
  0x3a   : > { %v747_v19 = vpack.c.bf16 %v396_v18, %v392_v17  ;;  %v230_v20 = vld [vmem:[%s224_s23] sm:$0xff]  ;;  %v741_v25 = vpack.c.bf16 %v393_v23, %v389_v22  ;;  %v749_v27 = vpack.c.bf16 %v395_v26, %v391_v24  ;;  %v398_v28 = vld [vmem:[#allocation2 + $0x48] sm:$0xff]  ;;  %v400_v30 = vld [vmem:[#allocation2 + $0x58] sm:$0xff]  ;;  %s216_s12 = scalar_lea.vmem [#allocation5], %s681_s10  ;;  %s578_s19 = scalar_lea.sflag [#allocation4], %s214_s9 }
  0x3b   : > { %732 = vmatpush3.bf16.msra.mxu0 %v731_v12  ;;  %v225_v21 = vld [vmem:[%s220_s6] sm:$0xff]  ;;  %v402_v29 = vld [vmem:[#allocation2 + $0x68] sm:$0xff]  ;;  %v404_v32 = vld [vmem:[#allocation2 + $0x78] sm:$0xff]  ;;  %s592_s13 = sshll.u32 %s216_s12, 4  ;;  %p1122_p9 = scmp.ne.s32.totalorder %s1115_s25, 0  ;;  %s1067_s13 = int_to_ptr.vmem [resolvable:$true] %s592_s13 }
  0x3c   : > { %738 = vmatpush3.bf16.msra.mxu1 %v737_v15  ;;  %740 = vmatprep.subr.bf16.mxu0 %v739_v16  ;;  %v743_v31 = vpack.c.bf16 %v402_v29, %v398_v28  ;;  %v397_v33 = vld [vmem:[#allocation2 + $0x40] sm:$0xff]  ;;  %v751_v34 = vpack.c.bf16 %v404_v32, %v400_v30  ;;  %v399_v36 = vld [vmem:[#allocation2 + $0x50] sm:$0xff]  ;;  %s838_s28 = scalar_lea.vmem %s1067_s13, 512  ;;  %s912_s27 = smov [#allocation5]  }
  0x3d   : > { %748 = vmatprep.subr.bf16.mxu1 %v747_v19  ;;  %v401_v35 = vld [vmem:[#allocation2 + $0x60] sm:$0xff]  ;;  %v403_v37 = vld [vmem:[#allocation2 + $0x70] sm:$0xff]  ;;  %p839_p6 = scmp.ne.s32.totalorder %s1067_s13, %s838_s28  ;;  %s842_s29 = sshll.u32 %s912_s27, 4  ;;  %s843_s29 = int_to_ptr.vmem [resolvable:$false] %s842_s29 }
  0x3e   : > { %714 = vmatmul.mubr.msk.f32.vlgmr.msra.gmra.mrb[0].mxu0 %vm235_vm1, %v230_v20  ;;  %v745_v38 = vpack.c.bf16 %v401_v35, %v397_v33  ;;  %v753_v39 = vpack.c.bf16 %v403_v37, %v399_v36  ;;  %v686_v42 = vld [vmem:[%s1109_s2 + $0x40] ss:$0 sm:$0xff]  ;;  %s844_s23 = scalar_lea.vmem %s843_s29, 1024  ;;  %p845_p2 = scmp.lt.s32.totalorder %s1067_s13, %s843_s29 }
  0x3f   : > { %725 = vmatmul.mubr.msk.f32.vlgmr.msra.gmra.mrb[0].mxu1 %vm235_vm1, %v225_v21  ;;  %495 = vmatprep.mubr.f32.mxu0 %v911_v1  ;;  %v406_v52 = vld [vmem:[#allocation2 + $0x80] ss:$8 sm:$0xf]  ;;  %p840_p10 = pnand %p839_p6, %p1122_p9  ;;  %p846_p3 = scmp.lt.s32.totalorder %s844_s23, %s838_s28 }
  0x40   : > { %566 = vmatprep.mubr.f32.mxu1 %v911_v1  ;;  %742 = vmatpush1.bf16.msra.mxu0 %v741_v25  ;;  %v411_v55 = vrot.slane %v406_v52, %v410_v50  ;;  %v419_v56 = vrot.slane %v406_v52, %v418_v51  ;;  %v415_v57 = vrot.slane %v406_v52, %v414_v53 }
  0x41   : > { %750 = vmatpush1.bf16.msra.mxu1 %v749_v27  ;;  %744 = vmatprep.subr.bf16.mxu0 %v743_v31  ;;  %v423_v58 = vrot.slane %v406_v52, %v422_v54  ;;  %p841_p12 = pneg %p840_p10  ;;  %p847_p4 = por %p846_p3, %p845_p2 }
  0x42   : > { %752 = vmatprep.subr.bf16.mxu1 %v751_v34 }
  0x43   : > { %p848_p7 = pnand %p847_p4, %p841_p12 }
  0x44   : > { %746 = vmatpush1.bf16.msra.mxu0 %v745_v38 }
  0x45   : > { %754 = vmatpush1.bf16.msra.mxu1 %v753_v39 }
 0x111   : > { %v305_v40 = vpop.f32.mrb[0].mxu0 }
 0x112   : > { %v378_v41 = vpop.f32.mrb[0].mxu1  ;;  %v715_v43 = vpop.f32.mrb[1].mxu0 }
 0x113   : > { %v379_v44 = vadd.f32 %v378_v41, %v305_v40  ;;  %v726_v45 = vpop.f32.mrb[1].mxu1 }
 0x115   : > { %v387_v46 = vadd.f32 %v686_v42, %v379_v44 }
 0x117   : > { %v388_v47 = vmax.f32 %v387_v46, 0.0 }
 0x119   : > { %687 = vmatmul.mubr.msk.f32.vlgmr.msra.gmra.mrb[2].mxu0 %vm235_vm1, %v388_v47  ;;  %688 = vmatmul.mubr.msk.f32.vlgmr.msra.gmra.mrb[2].mxu1 %vm235_vm1, %v388_v47 }
 0x1ec   : > { %v497_v59 = vpop.f32.mrb[2].mxu0  ;;  %v568_v60 = vpop.f32.mrb[2].mxu1 }
 0x1ed   : > { %v498_v61 = vadd.f32 %v497_v59, %v411_v55  ;;  %v569_v62 = vadd.f32 %v568_v60, %v419_v56  ;;  %v499_v63 = vpop.f32.mrb[3].mxu0  ;;  %v570_v0 = vpop.f32.mrb[3].mxu1 }
 0x1ee   : > { %v500_v1 = vadd.f32 %v499_v63, %v415_v57  ;;  %v571_v2 = vadd.f32 %v570_v0, %v423_v58 }
 0x1ef   : > { %573 = vst [vmem:[%s216_s12] sm:$0xff] %v498_v61  ;;  %575 = vst [vmem:[%s216_s12 + $0x10] sm:$0xff] %v569_v62 }
 0x1f0   : > { %574 = vst [vmem:[%s216_s12 + $0x8] sm:$0xff] %v500_v1  ;;  %576 = vst [vmem:[%s216_s12 + $0x18] sm:$0xff] %v571_v2 }
 0x1f1   : > { %851 = shalt.err (!%p848_p7)
}
 0x1f2   : > { %s852_s30 = scalar_lea.hbm %s1065_s22, 512  ;;  %s856_s7 = scalar_lea.hbm %s1111_s4, 1024 }
 0x1f3   : > { %p853_p8 = scmp.ne.s32.totalorder %s1065_s22, %s852_s30  ;;  %p857_p1 = scmp.lt.u32.totalorder %s1065_s22, %s1111_s4 }
 0x1f4   : > { %p858_p0 = scmp.lt.u32.totalorder %s856_s7, %s852_s30  ;;  %p860_p6 = scmp.lt.u32.totalorder %s852_s30, %s1065_s22 }
 0x1f5   : > { %p854_p11 = pnand %p853_p8, %p1122_p9 }
 0x1f6   : > { %p859_p5 = por %p858_p0, %p857_p1 }
 0x1f7   : > { %p855_p13 = pneg %p854_p11 }
 0x1f8   : > { %p861_p10 = por %p860_p6, %p859_p5 }
 0x1fa   : > { %p862_p12 = pnand %p861_p10, %p855_p13 }
 0x1fc   : > { %865 = shalt.err (!%p862_p12)
}
 0x1fd   : > { %759 = dma.vmem_to_hbm [thread:$0]  (%p1122_p9), %s1067_s13, 512, %s1065_s22, %s578_s19  }
 0x1fe PF: > { %p771_p2 = scmp.ge.s32.totalorder %s904_s18, 2  ;;  %s604_s10 = sand.u32 1, %s892_s15  }
 0x1ff   : > { %p1123_p3 = scmp.ne.s32.totalorder %s1116_s26, 0  ;;  %s605_s11 = scalar_lea.sflag [#allocation4], %s604_s10 }
 0x201   : > { %p766_p4 = pnand %p771_p2, %p1123_p3 }
 0x203   : > { %887 = dma.done.wait (!%p766_p4), %s605_s11, 512  }
 0x204   : > { %889 = vsyncadd (!%p766_p4), %s605_s11, 4294966784  ;;  %p15_p7 = scmp.ge.s32.totalorder %s963_s21, 4   ;;  %s1124_s15 = smov %s896_s16 }
 0x205   : > { %s1125_s16 = smov %s900_s17  ;;  %s1126_s17 = smov %s974_s24 }
 0x206   : > { %s1127_s18 = smov %s963_s21  ;;  %17 = sbr.rel (!%p15_p7) target bundleno = 4 (0x4), region = 80 }
 0x20d   :  { %610 = vsyncpa [#allocation3], 1 }
 0x20e   :  { %612 = vsyncpa [#allocation3 + $0x1], 1 }
 0x20f   :  { %613 = vsyncpa [#allocation4], 1 }
 0x210   :  { %615 = vsyncpa [#allocation4 + $0x1], 1 }

</bundles_post_ra>
